<compile_context>
chip_gen: v7x
topology: tpu7x:2x2x1
jax: 0.10.0
libtpu: 0.0.40
codegen_flags: <defaults>
</compile_context>

<pallas_src>
import functools

import jax
import jax.numpy as jnp
from jax.experimental import pallas as pl
from jax.experimental.pallas import tpu as pltpu


def _adaptive_pool_kernel(w_ref, x_ref, o_ref,
                          max_acc, sum_acc, attn_acc, m_acc, l_acc,
                          *, seq_len, ts, needs_mask):
    # w_ref:   SMEM (3,)        — [w_max, w_mean / S, w_attn] (already softmaxed)
    # x_ref:   VMEM (TB, TS, D) — one batch-tile x sequence-chunk (HBM dtype)
    # o_ref:   VMEM (TB, D)
    # scratch: max/sum/attn accumulators (TB, D) f32, online-softmax m,l (TB,1)
    k = pl.program_id(1)
    last = pl.num_programs(1) - 1

    @pl.when(k == 0)
    def _():
        max_acc[...] = jnp.full_like(max_acc, -jnp.inf)
        sum_acc[...] = jnp.zeros_like(sum_acc)
        attn_acc[...] = jnp.zeros_like(attn_acc)
        m_acc[...] = jnp.full_like(m_acc, -jnp.inf)
        l_acc[...] = jnp.zeros_like(l_acc)

    def step(masked):
        x = x_ref[...]                                        # (TB, TS, D)

        if masked:
            # Ragged tail of the sequence axis: only the LAST chunk pays these
            # full-tile select passes (and the OOB tail may hold garbage, so
            # zero it before it touches the matmul / score sum).
            pos = k * ts + jax.lax.broadcasted_iota(jnp.int32, (1, ts, 1), 1)
            valid = pos < seq_len                             # (1, TS, 1)
            x_mm = jnp.where(valid, x, jnp.zeros_like(x))
            x_mx = jnp.where(valid, x, jnp.full_like(x, -jnp.inf))
        else:
            x_mm = x
            x_mx = x

        # ---- max pool: VPU/XLU, accumulate in f32 ---------------------------
        chunk_max = jnp.max(x_mx, axis=1).astype(jnp.float32)      # (TB, D)
        max_acc[...] = jnp.maximum(max_acc[...], chunk_max)

        # ---- attention scores: lane reduce over D, f32 accumulation --------
        # TODO(synk): on v7x verify with pl.lower_as_mlir that the f32
        # accumulation here does not materialize a full-tile f32 temporary.
        s = jnp.sum(x_mm, axis=-1, dtype=jnp.float32)               # (TB, TS)
        if masked:
            s = jnp.where(valid[:, :, 0], s, -jnp.inf)

        # ---- online-softmax state update ------------------------------------
        # Invariant: every chunk has >=1 valid position (cdiv grid), so m_new
        # is finite and alpha never becomes NaN.
        m_prev = m_acc[...]                                         # (TB, 1)
        m_new = jnp.maximum(m_prev, jnp.max(s, axis=-1, keepdims=True))
        alpha = jnp.exp(m_prev - m_new)
        p = jnp.exp(s - m_new)                                      # (TB, TS)
        l_acc[...] = alpha * l_acc[...] + jnp.sum(p, axis=-1, keepdims=True)
        m_acc[...] = m_new

        # ---- both weighted sequence reductions in ONE batched MXU matmul ----
        #   row 0 = ones -> sum over S (mean pool)
        #   row 1 = p    -> softmax-weighted sum (attention pool)
        row = jax.lax.broadcasted_iota(jnp.int32, (p.shape[0], 2, p.shape[1]), 1)
        lhs = jnp.where(row == 0, 1.0, p[:, None, :]).astype(x.dtype)
        both = jnp.einsum('bkt,btd->bkd', lhs, x_mm,
                          preferred_element_type=jnp.float32,
                          precision=jax.lax.Precision.HIGHEST)      # (TB, 2, D)
        sum_acc[...] = sum_acc[...] + both[:, 0, :]
        attn_acc[...] = alpha * attn_acc[...] + both[:, 1, :]

    if needs_mask:
        @pl.when(k < last)
        def _():
            step(masked=False)

        @pl.when(k == last)
        def _():
            step(masked=True)
    else:
        step(masked=False)

    # ---- finalize at the last sequence chunk --------------------------------
    @pl.when(k == last)
    def _():
        attn = attn_acc[...] * pl.reciprocal(l_acc[...], approx=False)
        out = (w_ref[0] * max_acc[...]
               + w_ref[1] * sum_acc[...]          # w_ref[1] carries the 1/S
               + w_ref[2] * attn)
        o_ref[...] = out.astype(o_ref.dtype)


def _round_up(a, m):
    return (a + m - 1) // m * m


def _pick_block_config():
    """Per-generation (block_bytes, vmem_limit_bytes)."""
    try:
        vmem_cap = pltpu.get_tpu_info().vmem_capacity_bytes
    except Exception:
        vmem_cap = 64 * 1024 * 1024
    if vmem_cap >= 100 * 1024 * 1024:          # v5e / v6e: 128 MiB physical VMEM
        return 8 * 1024 * 1024, 64 * 1024 * 1024
    # v7x: 64 MiB per TensorCore — keep input double-buffers + temps well clear.
    return 6 * 1024 * 1024, 48 * 1024 * 1024


def adaptive_pooling_layer(x, attention_weights, *, block_bytes=None,
                           vmem_limit_bytes=None):
    """x: (B, S, D); attention_weights: (3,) raw parameter (pre-softmax)."""
    w = jax.nn.softmax(attention_weights.astype(jnp.float32), axis=0)

    if x.ndim == 2:
        # PyTorch's PoolingLayer passes 2-D inputs through unchanged; the
        # weighted combine then reduces to (w0 + w1 + w2) * x. Pure glue.
        return ((w[0] + w[1] + w[2]) * x.astype(jnp.float32)).astype(x.dtype)

    B, S, D = x.shape
    itemsize = jnp.dtype(x.dtype).itemsize

    default_block, default_vmem = _pick_block_config()
    if block_bytes is None:
        block_bytes = default_block
    if vmem_limit_bytes is None:
        vmem_limit_bytes = default_vmem

    # ---- tile selection ------------------------------------------------------
    row_bytes = S * D * itemsize                 # one (S, D) slab of one row
    if 8 * row_bytes <= block_bytes:
        # Whole sequence fits in one chunk: balance TB against B so batch
        # padding is bounded (<8 wasted rows per tile) instead of padding B up
        # to the largest TB that happens to fit.
        TS = S
        tb_max = max(8, (block_bytes // row_bytes) // 8 * 8)
        n_b = pl.cdiv(B, tb_max)
        if n_b == 1 and B >= 16:
            n_b = 2                              # give both v7x TCs work
        TB = _round_up(pl.cdiv(B, n_b), 8)
    else:
        # Long sequence: 8-row batch tile, chunk the sequence axis.
        TB = 8
        n_b = pl.cdiv(B, TB)
        TS = max(8, (block_bytes // (TB * D * itemsize)) // 8 * 8)
        TS = min(TS, S)

    B_pad = n_b * TB
    if B_pad != B:
        x = jnp.pad(x, ((0, B_pad - B), (0, 0), (0, 0)))

    n_s = pl.cdiv(S, TS)
    needs_mask = (S % TS) != 0

    # Fold the mean pool's 1/S into its mixing weight.
    w_kernel = jnp.stack([w[0], w[1] / S, w[2]])

    kernel = functools.partial(
        _adaptive_pool_kernel, seq_len=S, ts=TS, needs_mask=needs_mask)

    out = pl.pallas_call(
        kernel,
        out_shape=jax.ShapeDtypeStruct((B_pad, D), x.dtype),
        grid_spec=pltpu.PrefetchScalarGridSpec(
            num_scalar_prefetch=0,
            grid=(n_b, n_s),
            in_specs=[
                pl.BlockSpec(memory_space=pltpu.MemorySpace.SMEM),   # (3,) weights
                pl.BlockSpec((TB, TS, D), lambda b, k: (b, k, 0)),   # x tile
            ],
            out_specs=pl.BlockSpec((TB, D), lambda b, k: (b, 0)),
            scratch_shapes=[
                pltpu.VMEM((TB, D), jnp.float32),   # running max
                pltpu.VMEM((TB, D), jnp.float32),   # running sum (mean)
                pltpu.VMEM((TB, D), jnp.float32),   # attn weighted accumulator
                pltpu.VMEM((TB, 1), jnp.float32),   # online-softmax m
                pltpu.VMEM((TB, 1), jnp.float32),   # online-softmax l
            ],
        ),
        compiler_params=pltpu.CompilerParams(
            dimension_semantics=("parallel", "arbitrary"),
            vmem_limit_bytes=vmem_limit_bytes,
        ),
    )(w_kernel, x)

    return out[:B] if B_pad != B else out


def _reference(x, attention_weights):
    """Pure-JAX reference mirroring the PyTorch forward pass (f32)."""
    x = x.astype(jnp.float32)
    w = jax.nn.softmax(attention_weights.astype(jnp.float32), axis=0)
    max_p = jnp.max(x, axis=1)
    mean_p = jnp.mean(x, axis=1)
    aw = jax.nn.softmax(jnp.sum(x, axis=-1, keepdims=True), axis=1)
    attn_p = jnp.sum(x * aw, axis=1)
    return w[0] * max_p + w[1] * mean_p + w[2] * attn_p


if __name__ == "__main__":
    key = jax.random.PRNGKey(0)
    k1, k2, k3 = jax.random.split(key, 3)

    # nn.Parameter(torch.ones(3)) — deterministic init per the module's __init__.
    attention_weights = jnp.ones((3,), dtype=jnp.float32)

    # Case 1: small shape consistent with the module (batch=2, seq=8, embed=32).
    B, S, D = 2, 8, 32
    x1 = jax.random.normal(k1, (B, S, D), dtype=jnp.float32)
    out1 = jax.block_until_ready(adaptive_pooling_layer(x1, attention_weights))
    ref1 = _reference(x1, attention_weights)
    assert out1.shape == (B, D)
    assert jnp.allclose(out1, ref1, atol=1e-4, rtol=1e-4)

    # Case 2: tiny block budget forces batch padding (3 -> 8) and S tiling with
    # a ragged tail (S=20 in chunks of 8), exercising the masked-last-chunk path.
    B2, S2, D2 = 3, 20, 128
    x2 = jax.random.normal(k2, (B2, S2, D2), dtype=jnp.float32)
    out2 = jax.block_until_ready(
        adaptive_pooling_layer(x2, attention_weights,
                               block_bytes=8 * 8 * 128 * 4))
    ref2 = _reference(x2, attention_weights)
    assert out2.shape == (B2, D2)
    assert jnp.allclose(out2, ref2, atol=1e-4, rtol=1e-4)

    # Case 3: bf16 input — kernel keeps HBM traffic narrow and feeds the MXU in
    # bf16 with f32 accumulation.
    B3, S3, D3 = 4, 24, 128
    x3 = jax.random.normal(k3, (B3, S3, D3), dtype=jnp.float32).astype(jnp.bfloat16)
    out3 = jax.block_until_ready(adaptive_pooling_layer(x3, attention_weights))
    ref3 = _reference(x3, attention_weights)
    assert out3.shape == (B3, D3)
    assert jnp.allclose(out3.astype(jnp.float32), ref3, atol=3e-2, rtol=3e-2)

    # TODO(synk): optional D<128 lane-packing (fold sequence groups into the
    # lane axis) is not implemented; such shapes run below roofline by design.
    print("KERNEL_OK")
</pallas_src>

<mosaic_0001>
module attributes {stable_mosaic.version = 11 : i64} {
  func.func @_adaptive_pool_kernel(%arg0: i32, %arg1: i32, %arg2: memref<3xf32, #tpu.memory_space<smem>>, %arg3: memref<8x8x32xf32, #tpu.memory_space<vmem>>, %arg4: memref<8x32xf32, #tpu.memory_space<vmem>>, %arg5: memref<8x32xf32, #tpu.memory_space<vmem>>, %arg6: memref<8x32xf32, #tpu.memory_space<vmem>>, %arg7: memref<8x32xf32, #tpu.memory_space<vmem>>, %arg8: memref<8x1xf32, #tpu.memory_space<vmem>>, %arg9: memref<8x1xf32, #tpu.memory_space<vmem>>) attributes {dimension_semantics = [#tpu.dimension_semantics<parallel>, #tpu.dimension_semantics<arbitrary>], iteration_bounds = array<i64: 1, 1>, scalar_prefetch = 0 : i64, scratch_operands = 5 : i64, tpu.core_type = #tpu.core_type<tc>, window_params = [{transform_indices = @transform_0, window_bounds = array<i64: 3>}, {transform_indices = @transform_1, window_bounds = array<i64: 8, 8, 32>}, {transform_indices = @transform_2, window_bounds = array<i64: 8, 32>}]} {
    %c0_i32 = arith.constant 0 : i32
    %0 = arith.cmpi eq, %arg1, %c0_i32 : i32
    %1 = arith.extui %0 : i1 to i32
    %c0_i32_0 = arith.constant 0 : i32
    %2 = arith.cmpi ne, %1, %c0_i32_0 : i32
    scf.if %2 {
      %cst_31 = arith.constant 0xFF800000 : f32
      %49 = vector.broadcast %cst_31 : f32 to vector<8x32xf32>
      %c0_32 = arith.constant 0 : index
      %c0_33 = arith.constant 0 : index
      %50 = vector.load %arg5[%c0_32, %c0_33] : memref<8x32xf32, #tpu.memory_space<vmem>>, vector<8x32xf32>
      tpu.vector_store %arg5[%c0_32, %c0_33], %49 {strides = array<i32>} : memref<8x32xf32, #tpu.memory_space<vmem>>, vector<8x32xf32>,
      %cst_34 = arith.constant 0.000000e+00 : f32
      %51 = vector.broadcast %cst_34 : f32 to vector<8x32xf32>
      %c0_35 = arith.constant 0 : index
      %c0_36 = arith.constant 0 : index
      %52 = vector.load %arg6[%c0_35, %c0_36] : memref<8x32xf32, #tpu.memory_space<vmem>>, vector<8x32xf32>
      tpu.vector_store %arg6[%c0_35, %c0_36], %51 {strides = array<i32>} : memref<8x32xf32, #tpu.memory_space<vmem>>, vector<8x32xf32>,
      %cst_37 = arith.constant 0.000000e+00 : f32
      %53 = vector.broadcast %cst_37 : f32 to vector<8x32xf32>
      %c0_38 = arith.constant 0 : index
      %c0_39 = arith.constant 0 : index
      %54 = vector.load %arg7[%c0_38, %c0_39] : memref<8x32xf32, #tpu.memory_space<vmem>>, vector<8x32xf32>
      tpu.vector_store %arg7[%c0_38, %c0_39], %53 {strides = array<i32>} : memref<8x32xf32, #tpu.memory_space<vmem>>, vector<8x32xf32>,
      %cst_40 = arith.constant 0xFF800000 : f32
      %55 = vector.broadcast %cst_40 : f32 to vector<8x1xf32>
      %c0_41 = arith.constant 0 : index
      %c0_42 = arith.constant 0 : index
      %56 = vector.load %arg8[%c0_41, %c0_42] : memref<8x1xf32, #tpu.memory_space<vmem>>, vector<8x1xf32>
      tpu.vector_store %arg8[%c0_41, %c0_42], %55 {strides = array<i32>} : memref<8x1xf32, #tpu.memory_space<vmem>>, vector<8x1xf32>,
      %cst_43 = arith.constant 0.000000e+00 : f32
      %57 = vector.broadcast %cst_43 : f32 to vector<8x1xf32>
      %c0_44 = arith.constant 0 : index
      %c0_45 = arith.constant 0 : index
      %58 = vector.load %arg9[%c0_44, %c0_45] : memref<8x1xf32, #tpu.memory_space<vmem>>, vector<8x1xf32>
      tpu.vector_store %arg9[%c0_44, %c0_45], %57 {strides = array<i32>} : memref<8x1xf32, #tpu.memory_space<vmem>>, vector<8x1xf32>,
    } else {
    }
    %c0 = arith.constant 0 : index
    %c0_1 = arith.constant 0 : index
    %c0_2 = arith.constant 0 : index
    %3 = vector.load %arg3[%c0, %c0_1, %c0_2] : memref<8x8x32xf32, #tpu.memory_space<vmem>>, vector<8x8x32xf32>
    %cst = arith.constant dense<0xFF800000> : vector<8x32xf32>
    %4 = vector.multi_reduction <maximumf>, %3, %cst [1] : vector<8x8x32xf32> to vector<8x32xf32>
    %c0_3 = arith.constant 0 : index
    %c0_4 = arith.constant 0 : index
    %5 = vector.load %arg5[%c0_3, %c0_4] : memref<8x32xf32, #tpu.memory_space<vmem>>, vector<8x32xf32>
    %6 = arith.maximumf %5, %4 : vector<8x32xf32>
    %c0_5 = arith.constant 0 : index
    %c0_6 = arith.constant 0 : index
    %7 = vector.load %arg5[%c0_5, %c0_6] : memref<8x32xf32, #tpu.memory_space<vmem>>, vector<8x32xf32>
    tpu.vector_store %arg5[%c0_5, %c0_6], %6 {strides = array<i32>} : memref<8x32xf32, #tpu.memory_space<vmem>>, vector<8x32xf32>,
    %cst_7 = arith.constant dense<0.000000e+00> : vector<8x8xf32>
    %8 = vector.multi_reduction <add>, %3, %cst_7 [2] : vector<8x8x32xf32> to vector<8x8xf32>
    %c0_8 = arith.constant 0 : index
    %c0_9 = arith.constant 0 : index
    %9 = vector.load %arg8[%c0_8, %c0_9] : memref<8x1xf32, #tpu.memory_space<vmem>>, vector<8x1xf32>
    %cst_10 = arith.constant dense<0xFF800000> : vector<8xf32>
    %10 = vector.multi_reduction <maximumf>, %8, %cst_10 [1] : vector<8x8xf32> to vector<8xf32>
    %11 = vector.shape_cast %10 : vector<8xf32> to vector<8x1xf32>
    %12 = arith.maximumf %9, %11 : vector<8x1xf32>
    %13 = arith.subf %9, %12 : vector<8x1xf32>
    %14 = math.exp %13 : vector<8x1xf32>
    %15 = vector.broadcast %12 : vector<8x1xf32> to vector<8x8xf32>
    %16 = arith.subf %8, %15 : vector<8x8xf32>
    %17 = math.exp %16 : vector<8x8xf32>
    %c0_11 = arith.constant 0 : index
    %c0_12 = arith.constant 0 : index
    %18 = vector.load %arg9[%c0_11, %c0_12] : memref<8x1xf32, #tpu.memory_space<vmem>>, vector<8x1xf32>
    %19 = arith.mulf %14, %18 : vector<8x1xf32>
    %cst_13 = arith.constant dense<0.000000e+00> : vector<8xf32>
    %20 = vector.multi_reduction <add>, %17, %cst_13 [1] : vector<8x8xf32> to vector<8xf32>
    %21 = vector.shape_cast %20 : vector<8xf32> to vector<8x1xf32>
    %22 = arith.addf %19, %21 : vector<8x1xf32>
    %c0_14 = arith.constant 0 : index
    %c0_15 = arith.constant 0 : index
    %23 = vector.load %arg9[%c0_14, %c0_15] : memref<8x1xf32, #tpu.memory_space<vmem>>, vector<8x1xf32>
    tpu.vector_store %arg9[%c0_14, %c0_15], %22 {strides = array<i32>} : memref<8x1xf32, #tpu.memory_space<vmem>>, vector<8x1xf32>,
    %c0_16 = arith.constant 0 : index
    %c0_17 = arith.constant 0 : index
    %24 = vector.load %arg8[%c0_16, %c0_17] : memref<8x1xf32, #tpu.memory_space<vmem>>, vector<8x1xf32>
    tpu.vector_store %arg8[%c0_16, %c0_17], %12 {strides = array<i32>} : memref<8x1xf32, #tpu.memory_space<vmem>>, vector<8x1xf32>,
    %25 = tpu.iota {dimensions = array<i32: 1>} : vector<8x2x8xi32>
    %c0_i32_18 = arith.constant 0 : i32
    %26 = vector.broadcast %c0_i32_18 : i32 to vector<8x2x8xi32>
    %27 = arith.cmpi eq, %25, %26 : vector<8x2x8xi32>
    %28 = vector.shape_cast %17 : vector<8x8xf32> to vector<8x1x8xf32>
    %cst_19 = arith.constant 1.000000e+00 : f32
    %29 = vector.broadcast %cst_19 : f32 to vector<8x2x8xf32>
    %30 = vector.shape_cast %28 : vector<8x1x8xf32> to vector<8x1x8xf32>
    %31 = vector.broadcast %30 : vector<8x1x8xf32> to vector<8x2x8xf32>
    %32 = arith.select %27, %29, %31 : vector<8x2x8xi1>, vector<8x2x8xf32>
    "tpu.trace_start"() <{level = 10 : i32, message = "bkt,btd->bkd"}> : () -> ()
    %cst_20 = arith.constant dense<0.000000e+00> : vector<8x2x32xf32>
    %33 = tpu.matmul %32, %3, %cst_20 {dimension_numbers = #tpu.dot_dimension_numbers<[2], [1], [1], [2], [0, 0, 0, 1, 1, 2], [0], [0]>, precision = #tpu.contract_precision<fp32>} : vector<8x2x8xf32>, vector<8x8x32xf32>, vector<8x2x32xf32> -> vector<8x2x32xf32>
    "tpu.trace_stop"() : () -> ()
    %c0_21 = arith.constant 0 : index
    %c0_22 = arith.constant 0 : index
    %34 = vector.load %arg6[%c0_21, %c0_22] : memref<8x32xf32, #tpu.memory_space<vmem>>, vector<8x32xf32>
    %35 = vector.extract_strided_slice %33 {offsets = [0, 0, 0], sizes = [8, 1, 32], strides = [1, 1, 1]} : vector<8x2x32xf32> to vector<8x1x32xf32>
    %36 = vector.shape_cast %35 : vector<8x1x32xf32> to vector<8x32xf32>
    %37 = arith.addf %34, %36 : vector<8x32xf32>
    %c0_23 = arith.constant 0 : index
    %c0_24 = arith.constant 0 : index
    %38 = vector.load %arg6[%c0_23, %c0_24] : memref<8x32xf32, #tpu.memory_space<vmem>>, vector<8x32xf32>
    tpu.vector_store %arg6[%c0_23, %c0_24], %37 {strides = array<i32>} : memref<8x32xf32, #tpu.memory_space<vmem>>, vector<8x32xf32>,
    %c0_25 = arith.constant 0 : index
    %c0_26 = arith.constant 0 : index
    %39 = vector.load %arg7[%c0_25, %c0_26] : memref<8x32xf32, #tpu.memory_space<vmem>>, vector<8x32xf32>
    %40 = vector.broadcast %14 : vector<8x1xf32> to vector<8x32xf32>
    %41 = arith.mulf %40, %39 : vector<8x32xf32>
    %42 = vector.extract_strided_slice %33 {offsets = [0, 1, 0], sizes = [8, 1, 32], strides = [1, 1, 1]} : vector<8x2x32xf32> to vector<8x1x32xf32>
    %43 = vector.shape_cast %42 : vector<8x1x32xf32> to vector<8x32xf32>
    %44 = arith.addf %41, %43 : vector<8x32xf32>
    %c0_27 = arith.constant 0 : index
    %c0_28 = arith.constant 0 : index
    %45 = vector.load %arg7[%c0_27, %c0_28] : memref<8x32xf32, #tpu.memory_space<vmem>>, vector<8x32xf32>
    tpu.vector_store %arg7[%c0_27, %c0_28], %44 {strides = array<i32>} : memref<8x32xf32, #tpu.memory_space<vmem>>, vector<8x32xf32>,
    %c0_i32_29 = arith.constant 0 : i32
    %46 = arith.cmpi eq, %arg1, %c0_i32_29 : i32
    %47 = arith.extui %46 : i1 to i32
    %c0_i32_30 = arith.constant 0 : i32
    %48 = arith.cmpi ne, %47, %c0_i32_30 : i32
    scf.if %48 {
      %c0_31 = arith.constant 0 : index
      %c0_32 = arith.constant 0 : index
      %49 = vector.load %arg7[%c0_31, %c0_32] : memref<8x32xf32, #tpu.memory_space<vmem>>, vector<8x32xf32>
      %c0_33 = arith.constant 0 : index
      %c0_34 = arith.constant 0 : index
      %50 = vector.load %arg9[%c0_33, %c0_34] : memref<8x1xf32, #tpu.memory_space<vmem>>, vector<8x1xf32>
      %51 = tpu.reciprocal %50 : vector<8x1xf32> -> vector<8x1xf32>
      %52 = vector.broadcast %51 : vector<8x1xf32> to vector<8x32xf32>
      %53 = arith.mulf %49, %52 : vector<8x32xf32>
      %c0_35 = arith.constant 0 : index
      %54 = memref.load %arg2[%c0_35] : memref<3xf32, #tpu.memory_space<smem>>
      %c0_36 = arith.constant 0 : index
      %c0_37 = arith.constant 0 : index
      %55 = vector.load %arg5[%c0_36, %c0_37] : memref<8x32xf32, #tpu.memory_space<vmem>>, vector<8x32xf32>
      %56 = vector.broadcast %54 : f32 to vector<8x32xf32>
      %57 = arith.mulf %56, %55 : vector<8x32xf32>
      %c1 = arith.constant 1 : index
      %58 = memref.load %arg2[%c1] : memref<3xf32, #tpu.memory_space<smem>>
      %c0_38 = arith.constant 0 : index
      %c0_39 = arith.constant 0 : index
      %59 = vector.load %arg6[%c0_38, %c0_39] : memref<8x32xf32, #tpu.memory_space<vmem>>, vector<8x32xf32>
      %60 = vector.broadcast %58 : f32 to vector<8x32xf32>
      %61 = arith.mulf %60, %59 : vector<8x32xf32>
      %62 = arith.addf %57, %61 : vector<8x32xf32>
      %c2 = arith.constant 2 : index
      %63 = memref.load %arg2[%c2] : memref<3xf32, #tpu.memory_space<smem>>
      %64 = vector.broadcast %63 : f32 to vector<8x32xf32>
      %65 = arith.mulf %64, %53 : vector<8x32xf32>
      %66 = arith.addf %62, %65 : vector<8x32xf32>
      %c0_40 = arith.constant 0 : index
      %c0_41 = arith.constant 0 : index
      %67 = vector.load %arg4[%c0_40, %c0_41] : memref<8x32xf32, #tpu.memory_space<vmem>>, vector<8x32xf32>
      tpu.vector_store %arg4[%c0_40, %c0_41], %66 {strides = array<i32>} : memref<8x32xf32, #tpu.memory_space<vmem>>, vector<8x32xf32>,
    } else {
    }
    return
  }
  func.func @transform_0(%arg0: i32, %arg1: i32) -> i32 {
    %c0_i32 = arith.constant 0 : i32
    %c0_i32_0 = arith.constant 0 : i32
    return %c0_i32 : i32
  }
  func.func @transform_1(%arg0: i32, %arg1: i32) -> (i32, i32, i32) {
    %c0_i32 = arith.constant 0 : i32
    %c0_i32_0 = arith.constant 0 : i32
    return %arg0, %arg1, %c0_i32 : i32, i32, i32
  }
  func.func @transform_2(%arg0: i32, %arg1: i32) -> (i32, i32) {
    %c0_i32 = arith.constant 0 : i32
    %c0_i32_0 = arith.constant 0 : i32
    return %arg0, %c0_i32 : i32, i32
  }
}

</mosaic_0001>

<bundles_post_ra>
// kernel: tpu_custom_call.1
= control target key start
LH: loop header
LB: loop body
LE: loop exit
PB: predicated region body
PF: predicated region fallthrough
CT: control target
= control target key end

     0   :  { %7 = vsyncpa [#allocation10], 0  ;;  %s5128_s0 = inlined_call_operand.hbm [shape: f32[3], index: 0, kind: input, shape index: {}]   ;;  %s5129_s1 = inlined_call_operand.hbm [shape: f32[8,8,32], index: 1, kind: input, shape index: {}]   ;;  %s5130_s2 = inlined_call_operand.hbm [shape: f32[8,32], index: 2, kind: output, shape index: {}]  }
   0x1   :  { %8 = vsyncpa [#allocation8], 0 }
   0x2   :  { %9 = vsyncpa [#allocation9], 0  ;;  %s4523_s11 = scalar_lea.hbm %s5128_s0, 16 }
   0x3   :  { %p4524_p0 = scmp.ne.s32.totalorder %s5128_s0, %s4523_s11  ;;  %p4527_p1 = scmp.lt.u32.totalorder %s4523_s11, %s5128_s0 }
   0x5   :  { %p4529_p2 = pnand %p4527_p1, %p4524_p0 }
   0x7   :  { %4532 = shalt.err (!%p4529_p2)
}
   0x8   :  { %s4583_s16 = smov [#allocation7]   ;;  %s4584_s19 = smov [#allocation11]  }
   0x9   :  { %17 = dma.hbm_to_smem %s5128_s0, 16, %s4583_s16, [#allocation10]  }
   0xa   :  { %s23_s20 = sshll.u32 %s4584_s19, 4  ;;  %s4533_s23 = scalar_lea.hbm %s5129_s1, 1024  ;;  %s24_s20 = int_to_ptr.vmem [resolvable:$true] %s23_s20 }
   0xb   :  { %p4534_p3 = scmp.ne.s32.totalorder %s5129_s1, %s4533_s23  ;;  %p4537_p4 = scmp.lt.u32.totalorder %s4533_s23, %s5129_s1 }
   0xd   :  { %p4539_p5 = pnand %p4537_p4, %p4534_p3 }
   0xf   :  { %4542 = shalt.err (!%p4539_p5)
}
  0x10   :  { %s4543_s28 = scalar_lea.vmem %s24_s20, 1024  ;;  %p4548_p7 = scmp.lt.s32.totalorder %s24_s20, %s24_s20 }
  0x11   :  { %p4544_p6 = scmp.ne.s32.totalorder %s24_s20, %s4543_s28  ;;  %p4549_p8 = scmp.lt.s32.totalorder %s4543_s28, %s4543_s28 }
  0x13   :  { %p4550_p9 = por %p4549_p8, %p4548_p7 }
  0x15   :  { %p4551_p10 = pnand %p4550_p9, %p4544_p6 }
  0x17   :  { %4554 = shalt.err (!%p4551_p10)
}
  0x18   :  { %s4585_s0 = smov 128   ;;  %s4586_s29 = smov 8  }
  0x19   :  { %29 = dma.hbm_to_vmem [thread:$0]  %s5129_s1, 1024, %s24_s20, [#allocation8], %s4585_s0, %s4585_s0, %s4586_s29  }
  0x1a   :  { %4577 = dma.done.wait [#allocation10], 16  }
  0x1b   :  { %4578 = vsyncadd [#allocation10], 4294967280 }
  0x1c   :  { %4579 = dma.done.wait [#allocation8], 1024  }
  0x1d   :  { %4580 = vsyncadd [#allocation8], 4294966272 }
  0x1e   :  { %36 = sfence }
  0x1f   :  { %vm41_vm0 = vcmask 261120   ;;  %v4631_v0 = vld [vmem:[#allocation11] sm:$0xff]  ;;  %v4633_v1 = vld [vmem:[#allocation11 + $0x10] sm:$0xff]  ;;  %v4635_v2 = vld [vmem:[#allocation11 + $0x8] sm:$0xff]  ;;  %vm45_vm1 = vcmask 7168   ;;  %v4587_v16 = vmov -inf   ;;  %v172_v28 = vlaneseq }
  0x20   :  { %v139_v3 = vsel %vm41_vm0, %v4631_v0, 0.0  ;;  %v145_v4 = vsel %vm41_vm0, %v4633_v1, 0.0  ;;  %v4641_v5 = vld [vmem:[#allocation11 + $0x18] sm:$0xff]  ;;  %v142_v6 = vsel %vm41_vm0, %v4635_v2, 0.0  ;;  %v4647_v8 = vld [vmem:[#allocation11 + $0x20] sm:$0xff]  ;;  %v4649_v9 = vld [vmem:[#allocation11 + $0x28] sm:$0xff] }
  0x21   :  { %140 = vadd.xlane.f32.xlu0 %v139_v3  ;;  %146 = vadd.xlane.f32.xlu1 %v145_v4  ;;  %v148_v7 = vsel %vm41_vm0, %v4641_v5, 0.0  ;;  %v151_v10 = vsel %vm41_vm0, %v4647_v8, 0.0  ;;  %v154_v11 = vsel %vm41_vm0, %v4649_v9, 0.0  ;;  %v4655_v12 = vld [vmem:[#allocation11 + $0x30] sm:$0xff]  ;;  %v4657_v13 = vld [vmem:[#allocation11 + $0x38] sm:$0xff]  ;;  %46 = vst.msk [vmem:[#allocation5] sm:$0xff] %vm45_vm1, %v4587_v16 }
  0x22   :  { %v157_v14 = vsel %vm41_vm0, %v4655_v12, 0.0  ;;  %v160_v15 = vsel %vm41_vm0, %v4657_v13, 0.0  ;;  %42 = vst.msk [vmem:[#allocation2] sm:$0xff] %vm41_vm0, %v4587_v16  ;;  %v57_v17 = vsel %vm41_vm0, %v4631_v0, -inf  ;;  %v64_v18 = vsel %vm41_vm0, %v4635_v2, -inf  ;;  %s4044_s1 = sld [smem:[#allocation7]] }
  0x23   :  { %v58_v19 = vrot.slane %v57_v17, 4  ;;  %v71_v20 = vsel %vm41_vm0, %v4633_v1, -inf  ;;  %v65_v21 = vrot.slane %v64_v18, 4  ;;  %v78_v22 = vsel %vm41_vm0, %v4641_v5, -inf  ;;  %s4074_s4 = sld [smem:[#allocation7 + $0x1]]  ;;  %s4075_s5 = sld [smem:[#allocation7 + $0x2]] }
  0x24   :  { %v72_v23 = vrot.slane %v71_v20, 4  ;;  %v79_v26 = vrot.slane %v78_v22, 4  ;;  %v85_v27 = vsel %vm41_vm0, %v4647_v8, -inf  ;;  %v92_v34 = vsel %vm41_vm0, %v4649_v9, -inf  ;;  %s4591_s6 = smov [#allocation12]  }
  0x25   :  { %143 = vadd.xlane.f32.xlu0 %v142_v6  ;;  %149 = vadd.xlane.f32.xlu1 %v148_v7  ;;  %v59_v24 = vmax.f32 %v57_v17, %v58_v19  ;;  %v66_v25 = vmax.f32 %v64_v18, %v65_v21  ;;  %v86_v33 = vrot.slane %v85_v27, 4  ;;  %v173_v35 = vand.u32 127, %v172_v28  ;;  %s4064_s7 = sshll.u32 %s4591_s6, 4  ;;  %s4065_s7 = int_to_ptr.vmem [resolvable:$true] %s4064_s7 }
  0x26   :  { %v73_v29 = vmax.f32 %v71_v20, %v72_v23  ;;  %v80_v32 = vmax.f32 %v78_v22, %v79_v26  ;;  %v4677_v36 = vshrl.u32 %v172_v28, 7  ;;  %v93_v40 = vrot.slane %v92_v34, 4  ;;  %s4555_s8 = scalar_lea.vmem %s4065_s7, 128  ;;  %p4560_p12 = scmp.lt.s32.totalorder %s4065_s7, %s4065_s7 }
  0x27   :  { %v60_v30 = vrot.slane %v59_v24, 2  ;;  %v67_v31 = vrot.slane %v66_v25, 2  ;;  %v99_v41 = vsel %vm41_vm0, %v4655_v12, -inf  ;;  %v87_v43 = vmax.f32 %v85_v27, %v86_v33  ;;  %p4556_p11 = scmp.ne.s32.totalorder %s4065_s7, %s4555_s8  ;;  %p4561_p13 = scmp.lt.s32.totalorder %s4555_s8, %s4555_s8 }
  0x28   :  { %v74_v37 = vrot.slane %v73_v29, 2  ;;  %v81_v42 = vrot.slane %v80_v32, 2  ;;  %v106_v46 = vsel %vm41_vm0, %v4657_v13, -inf  ;;  %v4688_v47 = vsub.s32 %v173_v35, %v4677_v36 }
  0x29   :  { %152 = vadd.xlane.f32.xlu0 %v151_v10  ;;  %155 = vadd.xlane.f32.xlu1 %v154_v11  ;;  %v61_v38 = vmax.f32 %v59_v24, %v60_v30  ;;  %v68_v39 = vmax.f32 %v66_v25, %v67_v31  ;;  %v100_v49 = vrot.slane %v99_v41, 4  ;;  %v94_v52 = vmax.f32 %v92_v34, %v93_v40  ;;  %p4562_p0 = por %p4561_p13, %p4560_p12 }
  0x2a   :  { %v75_v48 = vmax.f32 %v73_v29, %v74_v37  ;;  %v82_v53 = vmax.f32 %v80_v32, %v81_v42  ;;  %v88_v54 = vrot.slane %v87_v43, 2  ;;  %v107_v55 = vrot.slane %v106_v46, 4 }
  0x2b   :  { %v62_v50 = vrot.slane %v61_v38, 1  ;;  %v69_v51 = vrot.slane %v68_v39, 1  ;;  %vm122_vm2 = vcmask 1041409   ;;  %vm124_vm3 = vcmask 1042434   ;;  %p4563_p1 = pnand %p4562_p0, %p4556_p11 }
  0x2c   :  { %v76_v61 = vrot.slane %v75_v48, 1  ;;  %v101_v62 = vmax.f32 %v99_v41, %v100_v49  ;;  %vm126_vm4 = vcmask 1043459   ;;  %v95_v6 = vrot.slane %v94_v52, 2 }
  0x2d   :  { %158 = vadd.xlane.f32.xlu0 %v157_v14  ;;  %161 = vadd.xlane.f32.xlu1 %v160_v15  ;;  %v63_v3 = vmax.f32 %v61_v38, %v62_v50  ;;  %v70_v4 = vmax.f32 %v68_v39, %v69_v51  ;;  %v83_v10 = vrot.slane %v82_v53, 1  ;;  %v89_v11 = vmax.f32 %v87_v43, %v88_v54 }
  0x2e   :  { %vm128_vm5 = vcmask 1044484   ;;  %v108_v17 = vmax.f32 %v106_v46, %v107_v55  ;;  %v77_v20 = vmax.f32 %v75_v48, %v76_v61  ;;  %v102_v21 = vrot.slane %v101_v62, 2 }
  0x2f   :  { %v96_v23 = vmax.f32 %v94_v52, %v95_v6  ;;  %v123_v24 = vsel %vm122_vm2, %v70_v4, %v63_v3  ;;  %vm130_vm6 = vcmask 1045509   ;;  %v84_v26 = vmax.f32 %v82_v53, %v83_v10 }
  0x30   :  { %v90_v27 = vrot.slane %v89_v11, 1  ;;  %vm132_vm7 = vcmask 1046534   ;;  %v109_v30 = vrot.slane %v108_v17, 2  ;;  %vm134_vm8 = vcmask 1047559  }
  0x31   :  { %v103_v33 = vmax.f32 %v101_v62, %v102_v21  ;;  %v125_v34 = vsel %vm124_vm3, %v77_v20, %v123_v24  ;;  %vm214_vm9 = vcmask 64512   ;;  %v97_v37 = vrot.slane %v96_v23, 1  ;;  %v163_v62 = vld [vmem:[#allocation5] sm:$0xff] }
  0x32   :  { %v91_v39 = vmax.f32 %v89_v11, %v90_v27  ;;  %v110_v41 = vmax.f32 %v108_v17, %v109_v30  ;;  %v127_v42 = vsel %vm126_vm4, %v84_v26, %v125_v34  ;;  %v4589_v61 = vmov 0.0  }
  0x33   :  { %v104_v46 = vrot.slane %v103_v33, 1  ;;  %v98_v48 = vmax.f32 %v96_v23, %v97_v37  ;;  %44 = vst.msk [vmem:[#allocation4] sm:$0xff] %vm41_vm0, %v4589_v61  ;;  %43 = vst.msk [vmem:[#allocation3] sm:$0xff] %vm41_vm0, %v4589_v61  ;;  %4172 = vmatprep.subr.mxu0 %v4589_v61  ;;  %4202 = vmatprep.subr.mxu1 %v4589_v61  ;;  %v228_v6 = vsub.s32 0, %v4677_v36  ;;  %v236_v10 = vsub.s32 2, %v4677_v36 }
  0x34   :  { %v129_v49 = vsel %vm128_vm5, %v91_v39, %v127_v42  ;;  %v111_v50 = vrot.slane %v110_v41, 1  ;;  %47 = vst.msk [vmem:[#allocation6] sm:$0xff] %vm45_vm1, %v4589_v61  ;;  %v240_v11 = vsub.s32 3, %v4677_v36  ;;  %v248_v30 = vsub.s32 5, %v4677_v36 }
  0x35   :  { %v105_v51 = vmax.f32 %v103_v33, %v104_v46  ;;  %v131_v52 = vsel %vm130_vm6, %v98_v48, %v129_v49  ;;  %vm4590_vm10 = vmmov 0   ;;  %vm373_vm11 = vcmp.eq.s32.totalorder %v4677_v36, 0 }
  0x36   :  { %v112_v53 = vmax.f32 %v110_v41, %v111_v50  ;;  %4174 = vmatprep.mubr.msk.f32.mxu0 %vm4590_vm10, %v4589_v61  ;;  %4204 = vmatprep.mubr.msk.f32.mxu1 %vm4590_vm10, %v4589_v61 }
  0x37   :  { %v133_v54 = vsel %vm132_vm7, %v105_v51, %v131_v52  ;;  %v4763_v52 = vand.u32 4294901760, %v4631_v0 }
  0x38   :  { %v135_v55 = vsel %vm134_vm8, %v112_v53, %v133_v54  ;;  %v4766_v53 = vand.u32 4294901760, %v4635_v2 }
  0x39   :  { %4173 = vmatpush3.msra.mxu0 %v4763_v52 }
  0x3a   :  { %4177 = vmatprep.subr.mxu0 %v4589_v61  ;;  %4203 = vmatpush3.msra.mxu1 %v4766_v53 }
  0x3b   :  { %4207 = vmatprep.subr.mxu1 %v4589_v61 }
  0xae   :  { %v4681_v44 = vpop.xlane.xlu0 %140  ;;  %v4683_v45 = vpop.xlane.xlu1 %146 }
  0xaf   :  { %v177_v58 = vrot.slane %v4681_v44, %v4688_v47  ;;  %v185_v63 = vrot.slane %v4683_v45, %v4688_v47 }
  0xb2   :  { %v4690_v56 = vpop.xlane.xlu0 %143  ;;  %v4692_v57 = vpop.xlane.xlu1 %149 }
  0xb3   :  { %v181_v59 = vrot.slane %v4690_v56, %v4688_v47  ;;  %v189_v60 = vrot.slane %v4692_v57, %v4688_v47 }
  0xb5   :  { %v206_v7 = vsel %vm122_vm2, %v181_v59, %v177_v58  ;;  %v113_v58 = vld [vmem:[#allocation2] sm:$0xff] }
  0xb6   :  { %v207_v14 = vsel %vm124_vm3, %v185_v63, %v206_v7  ;;  %v4704_v15 = vpop.xlane.xlu0 %152  ;;  %v4706_v16 = vpop.xlane.xlu1 %155  ;;  %v137_v59 = vmax.f32 %v113_v58, %v135_v55  ;;  %v232_v7 = vsub.s32 1, %v4677_v36  ;;  %v4779_v58 = vsub.f32 %v4631_v0, %v4763_v52 }
  0xb7   :  { %v208_v18 = vsel %vm126_vm4, %v189_v60, %v207_v14  ;;  %v193_v19 = vrot.slane %v4704_v15, %v4688_v47  ;;  %v197_v22 = vrot.slane %v4706_v16, %v4688_v47  ;;  %v4588_v60 = vmov 0  }
  0xb8   :  { %4501 = vset.pattern.permute.xlu1 %v4588_v60  ;;  %4502 = vset.pattern.permute.xlu0 %v4588_v60  ;;  %138 = vst.msk [vmem:[#allocation2] sm:$0xff] %vm41_vm0, %v137_v59  ;;  %v472_v0 = vand.u32 4294901760, %v4779_v58 }
  0xb9   :  { %v209_v25 = vsel %vm128_vm5, %v193_v19, %v208_v18 }
  0xba   :  { %v4715_v28 = vpop.xlane.xlu0 %158  ;;  %v4717_v29 = vpop.xlane.xlu1 %161  ;;  %v210_v35 = vsel %vm130_vm6, %v197_v22, %v209_v25  ;;  %v244_v22 = vsub.s32 4, %v4677_v36 }
  0xbb   :  { %v201_v31 = vrot.slane %v4715_v28, %v4688_v47  ;;  %v205_v32 = vrot.slane %v4717_v29, %v4688_v47 }
  0xbd   :  { %v211_v38 = vsel %vm132_vm7, %v201_v31, %v210_v35 }
  0xbe   :  { %v212_v40 = vsel %vm134_vm8, %v205_v32, %v211_v38 }
  0xbf   :  { %v215_v43 = vsel %vm214_vm9, %v212_v40, -inf }
  0xc0   :  { %216 = vmax.xlane.f32.xlu0 %v215_v43 }
 0x14d   :  { %v217_v63 = vpop.xlane.xlu0 %216 }
 0x14e   :  { %v218_v3 = vmax.f32 %v163_v62, %v217_v63 }
 0x150   :  { %v219_v4 = vsub.f32 %v163_v62, %v218_v3  ;;  %370 = vst.msk [vmem:[#allocation5] sm:$0xff] %vm45_vm1, %v218_v3  ;;  %224 = vperm.xlu1 %4501, %v218_v3   ;;  %v4784_v62 = vsub.f32 %v4635_v2, %v4766_v53 }
 0x152   :  { %v220_v27 = vmul.f32 1.442695, %v219_v4  ;;  %v921_v2 = vand.u32 4294901760, %v4784_v62 }
 0x1cf   :  { %v225_v14 = vpop.permute.xlu1 %224 }
 0x1d0   :  { %v229_v17 = vrot.slane %v225_v14, %v228_v6  ;;  %v233_v18 = vrot.slane %v225_v14, %v232_v7  ;;  %v237_v19 = vrot.slane %v225_v14, %v236_v10  ;;  %v241_v23 = vrot.slane %v225_v14, %v240_v11 }
 0x1d1   :  { %v245_v31 = vrot.slane %v225_v14, %v244_v22  ;;  %v922_v22 = vsub.f32 %v4784_v62, %v921_v2 }
 0x1d2   :  { %v266_v20 = vsub.f32 %v4681_v44, %v229_v17  ;;  %v267_v21 = vsub.f32 %v4690_v56, %v233_v18  ;;  %v268_v24 = vsub.f32 %v4683_v45, %v237_v19  ;;  %v269_v32 = vsub.f32 %v4692_v57, %v241_v23 }
 0x1d3   :  { %v252_v44 = vsub.s32 6, %v4677_v36  ;;  %v249_v56 = vrot.slane %v225_v14, %v248_v30  ;;  %v270_v34 = vsub.f32 %v4704_v15, %v245_v31  ;;  %v256_v45 = vsub.s32 7, %v4677_v36 }
 0x1d4   :  { %v274_v25 = vmul.f32 1.442695, %v266_v20  ;;  %v276_v26 = vmul.f32 1.442695, %v267_v21  ;;  %v278_v33 = vmul.f32 1.442695, %v268_v24  ;;  %v473_v19 = vsub.f32 %v4779_v58, %v472_v0 }
 0x1d5   :  { %v280_v35 = vmul.f32 1.442695, %v269_v32  ;;  %v253_v37 = vrot.slane %v225_v14, %v252_v44  ;;  %v271_v38 = vsub.f32 %v4706_v16, %v249_v56  ;;  %v282_v39 = vmul.f32 1.442695, %v270_v34 }
 0x1d6   :  { %4503 = vpow2.f32 %v274_v25  ;;  %v257_v57 = vrot.slane %v225_v14, %v256_v45  ;;  %v474_v25 = vand.u32 4294901760, %v473_v19  ;;  %v923_v31 = vand.u32 4294901760, %v922_v22 }
 0x1d7   :  { %4505 = vpow2.f32 %v276_v26  ;;  %v272_v42 = vsub.f32 %v4715_v28, %v253_v37  ;;  %v284_v43 = vmul.f32 1.442695, %v271_v38  ;;  %v4889_v36 = vand.u32 4294901760, %v4641_v5 }
 0x1d8   :  { %4507 = vpow2.f32 %v220_v27  ;;  %v273_v48 = vsub.f32 %v4717_v29, %v257_v57  ;;  %v4957_v22 = vand.u32 4294901760, %v4649_v9 }
 0x1d9   :  { %4509 = vpow2.f32 %v278_v33  ;;  %v286_v16 = vmul.f32 1.442695, %v272_v42 }
 0x1da   :  { %4511 = vpow2.f32 %v280_v35  ;;  %v288_v50 = vmul.f32 1.442695, %v273_v48 }
 0x1db   :  { %4513 = vpow2.f32 %v282_v39 }
 0x1dc   :  { %4515 = vpow2.f32 %v284_v43 }
 0x1dd   :  { %4517 = vpow2.f32 %v286_v16 }
 0x1de   :  { %4519 = vpow2.f32 %v288_v50 }
 0x1e0   :  { %v4504_v40 = vpop.eup %4503 }
 0x1e1   :  { %v4506_v41 = vpop.eup %4505  ;;  %301 = vperm.xlu0 %4502, %v4504_v40  }
 0x1e2   :  { %304 = vperm.xlu1 %4501, %v4506_v41   ;;  %v4758_v46 = vpop.eup %4507 }
 0x1e3   :  { %v4510_v15 = vpop.eup %4509 }
 0x1e4   :  { %v4512_v49 = vpop.eup %4511 }
 0x1e5   :  { %4011 = vperm.xlu0 %4502, %v4758_v46   ;;  %v4514_v51 = vpop.eup %4513 }
 0x1e6   :  { %307 = vperm.xlu1 %4501, %v4510_v15   ;;  %v4516_v28 = vpop.eup %4515 }
 0x1e7   :  { %v4518_v54 = vpop.eup %4517 }
 0x1e8   :  { %v4520_v29 = vpop.eup %4519 }
 0x1ea   :  { %310 = vperm.xlu1 %4501, %v4512_v49  }
 0x1ee   :  { %313 = vperm.xlu1 %4501, %v4514_v51  }
 0x1f2   :  { %316 = vperm.xlu1 %4501, %v4516_v28  }
 0x1f6   :  { %319 = vperm.xlu1 %4501, %v4518_v54  }
 0x1fa   :  { %322 = vperm.xlu1 %4501, %v4520_v29  }
 0x260   :  { %v302_v55 = vpop.permute.xlu0 %301 }
 0x261   :  { %v305_v59 = vpop.permute.xlu1 %304  ;;  %v327_v60 = vrot.slane %v302_v55, %v4688_v47 }
 0x262   :  { %v331_v63 = vrot.slane %v305_v59, %v4688_v47  ;;  %v4880_v59 = vand.u32 4294901760, %v4633_v1 }
 0x263   :  { %v382_v3 = vsel %vm373_vm11, 1.0, %v327_v60 }
 0x264   :  { %v383_v4 = vsel %vm373_vm11, 1.0, %v331_v63  ;;  %v391_v6 = vsel %vm214_vm9, %v382_v3, 0  ;;  %v356_v39 = vsel %vm122_vm2, %v331_v63, %v327_v60  ;;  %v1818_v3 = vsub.f32 %v4641_v5, %v4889_v36 }
 0x265   :  { %v840_v7 = vsel %vm214_vm9, %v383_v4, 0  ;;  %v4794_v10 = vand.u32 4294901760, %v391_v6  ;;  %v308_v11 = vpop.permute.xlu1 %307 }
 0x266   :  { %v4797_v14 = vand.u32 4294901760, %v840_v7  ;;  %v335_v35 = vrot.slane %v308_v11, %v4688_v47 }
 0x267   :  { %v4800_v17 = vsub.f32 %v391_v6, %v4794_v10 }
 0x268   :  { %v4803_v18 = vsub.f32 %v840_v7, %v4797_v14  ;;  %v357_v41 = vsel %vm124_vm3, %v335_v35, %v356_v39 }
 0x269   :  { %v311_v20 = vpop.permute.xlu1 %310  ;;  %v461_v21 = vand.u32 4294901760, %v4800_v17 }
 0x26a   :  { %v910_v23 = vand.u32 4294901760, %v4803_v18  ;;  %v339_v45 = vrot.slane %v311_v20, %v4688_v47  ;;  %v4950_v20 = vand.u32 4294901760, %v4647_v8 }
 0x26b   :  { %v462_v24 = vsub.f32 %v4800_v17, %v461_v21 }
 0x26c   :  { %v911_v26 = vsub.f32 %v4803_v18, %v910_v23  ;;  %v358_v57 = vsel %vm126_vm4, %v339_v45, %v357_v41  ;;  %v385_v54 = vsel %vm373_vm11, 1.0, %v339_v45 }
 0x26d   :  { %v314_v27 = vpop.permute.xlu1 %313  ;;  %v463_v30 = vand.u32 4294901760, %v462_v24  ;;  %v1738_v55 = vsel %vm214_vm9, %v385_v54, 0  ;;  %v2267_v24 = vsub.f32 %v4647_v8, %v4950_v20 }
 0x26e   :  { %v343_v32 = vrot.slane %v314_v27, %v4688_v47  ;;  %v912_v33 = vand.u32 4294901760, %v911_v26  ;;  %v4891_v63 = vand.u32 4294901760, %v1738_v55  ;;  %v2716_v26 = vsub.f32 %v4649_v9, %v4957_v22 }
 0x26f   :  { %4175 = vmatmul.mubr.f32.vlgmr.msra.gmra.mrb[0].mxu0 %v463_v30  ;;  %v2268_v30 = vand.u32 4294901760, %v2267_v24 }
 0x270   :  { %v4818_v44 = vsel %vm373_vm11, 1.0, %v343_v32  ;;  %4178 = vmatpush3.msra.mxu0 %v474_v25  ;;  %4205 = vmatmul.mubr.f32.vlgmr.msra.gmra.mrb[0].mxu1 %v912_v33  ;;  %v359_v43 = vsel %vm128_vm5, %v343_v32, %v358_v57  ;;  %v1807_v4 = vsub.f32 %v1738_v55, %v4891_v63  ;;  %v2717_v8 = vand.u32 4294901760, %v2716_v26 }
 0x271   :  { %4208 = vmatpush3.msra.mxu1 %v923_v31  ;;  %v317_v56 = vpop.permute.xlu1 %316  ;;  %4179 = vmatprep.mubr.msk.f32.mxu0 %vm4590_vm10, %v4589_v61  ;;  %v2269_v9 = vsub.f32 %v2267_v24, %v2268_v30  ;;  %v5025_v57 = vand.u32 4294901760, %v4657_v13 }
 0x272   :  { %v347_v34 = vrot.slane %v317_v56, %v4688_v47  ;;  %4182 = vmatprep.subr.mxu0 %v4589_v61  ;;  %4209 = vmatprep.mubr.msk.f32.mxu1 %vm4590_vm10, %v4589_v61  ;;  %v1808_v7 = vand.u32 4294901760, %v1807_v4 }
 0x273   :  { %4212 = vmatprep.subr.mxu1 %v4589_v61 }
 0x274   :  { %v4831_v37 = vsel %vm373_vm11, 1.0, %v347_v34  ;;  %v360_v48 = vsel %vm130_vm6, %v347_v34, %v359_v43  ;;  %v2270_v34 = vand.u32 4294901760, %v2269_v9 }
 0x275   :  { %v320_v38 = vpop.permute.xlu1 %319 }
 0x276   :  { %v351_v40 = vrot.slane %v320_v38, %v4688_v47 }
 0x277   :  { %4180 = vmatmul.mubr.f32.vlgmr.msra.gmra.mrb[0].mxu0 %v4794_v10 }
 0x278   :  { %v4840_v42 = vsel %vm373_vm11, 1.0, %v351_v40  ;;  %4183 = vmatpush3.msra.mxu0 %v4779_v58  ;;  %4210 = vmatmul.mubr.f32.vlgmr.msra.gmra.mrb[0].mxu1 %v4797_v14  ;;  %v361_v49 = vsel %vm132_vm7, %v351_v40, %v360_v48  ;;  %v1369_v58 = vsub.f32 %v4633_v1, %v4880_v59  ;;  %v1819_v1 = vand.u32 4294901760, %v1818_v3 }
 0x279   :  { %4213 = vmatpush3.msra.mxu1 %v4784_v62  ;;  %v323_v15 = vpop.permute.xlu1 %322  ;;  %4184 = vmatprep.mubr.msk.f32.mxu0 %vm4590_vm10, %v4589_v61  ;;  %v3085_v38 = vsel %vm214_vm9, %v4840_v42, 0  ;;  %v5018_v40 = vand.u32 4294901760, %v4655_v12  ;;  %v3614_v48 = vsub.f32 %v4657_v13, %v5025_v57 }
 0x27a   :  { %v355_v16 = vrot.slane %v323_v15, %v4688_v47  ;;  %4187 = vmatprep.subr.mxu0 %v4589_v61  ;;  %4214 = vmatprep.mubr.msk.f32.mxu1 %vm4590_vm10, %v4589_v61  ;;  %v384_v47 = vsel %vm373_vm11, 1.0, %v335_v35  ;;  %v1370_v6 = vand.u32 4294901760, %v1369_v58  ;;  %v1820_v11 = vsub.f32 %v1818_v3, %v1819_v1 }
 0x27b   :  { %4217 = vmatprep.subr.mxu1 %v4589_v61  ;;  %v1289_v29 = vsel %vm214_vm9, %v384_v47, 0  ;;  %v5020_v41 = vand.u32 4294901760, %v3085_v38  ;;  %v3165_v42 = vsub.f32 %v4655_v12, %v5018_v40  ;;  %v3615_v12 = vand.u32 4294901760, %v3614_v48 }
 0x27c   :  { %v4857_v50 = vsel %vm373_vm11, 1.0, %v355_v16  ;;  %v362_v51 = vsel %vm134_vm8, %v355_v16, %v361_v49  ;;  %v4882_v60 = vand.u32 4294901760, %v1289_v29  ;;  %v1371_v5 = vsub.f32 %v1369_v58, %v1370_v6 }
 0x27d   :  { %v364_v28 = vsel %vm214_vm9, %v362_v51, 0.0  ;;  %v3534_v39 = vsel %vm214_vm9, %v4857_v50, 0  ;;  %v3154_v15 = vsub.f32 %v3085_v38, %v5020_v41  ;;  %v3166_v49 = vand.u32 4294901760, %v3165_v42 }
 0x27e   :  { %365 = vadd.xlane.f32.xlu1 %v364_v28  ;;  %v1358_v62 = vsub.f32 %v1289_v29, %v4882_v60  ;;  %v5027_v43 = vand.u32 4294901760, %v3534_v39  ;;  %v3616_v47 = vsub.f32 %v3614_v48, %v3615_v12 }
 0x27f   :  { %4185 = vmatmul.mubr.f32.vlgmr.msra.gmra.mrb[0].mxu0 %v4800_v17  ;;  %v3155_v50 = vand.u32 4294901760, %v3154_v15  ;;  %v3167_v13 = vsub.f32 %v3165_v42, %v3166_v49 }
 0x280   :  { %4188 = vmatpush3.msra.mxu0 %v4763_v52  ;;  %4215 = vmatmul.mubr.f32.vlgmr.msra.gmra.mrb[0].mxu1 %v4803_v18  ;;  %v1821_v18 = vand.u32 4294901760, %v1820_v11  ;;  %v3603_v16 = vsub.f32 %v3534_v39, %v5027_v43 }
 0x281   :  { %4218 = vmatpush3.msra.mxu1 %v4766_v53  ;;  %4189 = vmatprep.mubr.msk.f32.mxu0 %vm4590_vm10, %v4589_v61  ;;  %v3156_v28 = vsub.f32 %v3154_v15, %v3155_v50  ;;  %v3168_v29 = vand.u32 4294901760, %v3167_v13  ;;  %v4045_v13 = vld [vmem:[#allocation2] sm:$0xff] }
 0x282   :  { %4192 = vmatprep.subr.mxu0 %v4589_v61  ;;  %4219 = vmatprep.mubr.msk.f32.mxu1 %vm4590_vm10, %v4589_v61  ;;  %v3604_v51 = vand.u32 4294901760, %v3603_v16 }
 0x283   :  { %4222 = vmatprep.subr.mxu1 %v4589_v61  ;;  %v3157_v55 = vand.u32 4294901760, %v3156_v28  ;;  %v4046_v28 = vstv %s4044_s1 }
 0x284   :  { %v3605_v54 = vsub.f32 %v3603_v16, %v3604_v51 }
 0x287   :  { %4190 = vmatmul.mubr.f32.vlgmr.msra.gmra.mrb[0].mxu0 %v461_v21 }
 0x288   :  { %4193 = vmatpush3.msra.mxu0 %v472_v0  ;;  %4220 = vmatmul.mubr.f32.vlgmr.msra.gmra.mrb[0].mxu1 %v910_v23  ;;  %v1359_v0 = vand.u32 4294901760, %v1358_v62 }
 0x289   :  { %4223 = vmatpush3.msra.mxu1 %v921_v2  ;;  %4194 = vmatprep.mubr.msk.f32.mxu0 %vm4590_vm10, %v4589_v61  ;;  %v1809_v2 = vsub.f32 %v1807_v4, %v1808_v7 }
 0x28a   :  { %4197 = vmatprep.subr.mxu0 %v4589_v61  ;;  %4224 = vmatprep.mubr.msk.f32.mxu1 %vm4590_vm10, %v4589_v61 }
 0x28b   :  { %4227 = vmatprep.subr.mxu1 %v4589_v61  ;;  %v1810_v19 = vand.u32 4294901760, %v1809_v2 }
 0x28f   :  { %4195 = vmatmul.mubr.f32.vlgmr.msra.gmra.mrb[0].mxu0 %v4794_v10 }
 0x290   :  { %4198 = vmatpush3.msra.mxu0 %v4763_v52  ;;  %4225 = vmatmul.mubr.f32.vlgmr.msra.gmra.mrb[0].mxu1 %v4797_v14  ;;  %v1360_v52 = vsub.f32 %v1358_v62, %v1359_v0 }
 0x291   :  { %4228 = vmatpush3.msra.mxu1 %v4766_v53  ;;  %4199 = vmatprep.mubr.msk.f32.mxu0 %vm4590_vm10, %v4589_v61  ;;  %v1372_v53 = vand.u32 4294901760, %v1371_v5 }
 0x292   :  { %4229 = vmatprep.mubr.msk.f32.mxu1 %vm4590_vm10, %v4589_v61  ;;  %4232 = vmatprep.subr.mxu0 %v4589_v61  ;;  %v1361_v17 = vand.u32 4294901760, %v1360_v52 }
 0x293   :  { %4262 = vmatprep.subr.mxu1 %v4589_v61 }
 0x297   :  { %4200 = vmatmul.mubr.f32.vlgmr.msra.gmra.mrb[0].mxu0 %v4794_v10  ;;  %v2187_v10 = vsel %vm214_vm9, %v4818_v44, 0  ;;  %v2718_v44 = vsub.f32 %v2716_v26, %v2717_v8 }
 0x298   :  { %4230 = vmatmul.mubr.f32.vlgmr.msra.gmra.mrb[0].mxu1 %v4797_v14  ;;  %4233 = vmatpush3.msra.mxu0 %v4880_v59  ;;  %v2636_v14 = vsel %vm214_vm9, %v4831_v37, 0  ;;  %v4952_v21 = vand.u32 4294901760, %v2187_v10 }
 0x299   :  { %4263 = vmatpush3.msra.mxu1 %v4889_v36  ;;  %4234 = vmatprep.mubr.msk.f32.mxu0 %vm4590_vm10, %v4589_v61  ;;  %v4959_v23 = vand.u32 4294901760, %v2636_v14  ;;  %v2719_v45 = vand.u32 4294901760, %v2718_v44 }
 0x29a   :  { %4237 = vmatprep.subr.mxu0 %v4589_v61  ;;  %4264 = vmatprep.mubr.msk.f32.mxu1 %vm4590_vm10, %v4589_v61  ;;  %v2256_v25 = vsub.f32 %v2187_v10, %v4952_v21 }
 0x29b   :  { %4235 = vmatmul.mubr.f32.vlgmr.msra.gmra.mrb[2].mxu0 %v1361_v17  ;;  %4267 = vmatprep.subr.mxu1 %v4589_v61  ;;  %v2705_v27 = vsub.f32 %v2636_v14, %v4959_v23 }
 0x29c   :  { %4238 = vmatpush3.msra.mxu0 %v1372_v53  ;;  %4265 = vmatmul.mubr.f32.vlgmr.msra.gmra.mrb[2].mxu1 %v1810_v19  ;;  %v2257_v31 = vand.u32 4294901760, %v2256_v25 }
 0x29d   :  { %4268 = vmatpush3.msra.mxu1 %v1821_v18  ;;  %4239 = vmatprep.mubr.msk.f32.mxu0 %vm4590_vm10, %v4589_v61  ;;  %v2706_v32 = vand.u32 4294901760, %v2705_v27 }
 0x29e   :  { %4242 = vmatprep.subr.mxu0 %v4589_v61  ;;  %4269 = vmatprep.mubr.msk.f32.mxu1 %vm4590_vm10, %v4589_v61  ;;  %v2258_v33 = vsub.f32 %v2256_v25, %v2257_v31 }
 0x29f   :  { %4272 = vmatprep.subr.mxu1 %v4589_v61  ;;  %v2707_v56 = vsub.f32 %v2705_v27, %v2706_v32 }
 0x2a0   :  { %v2259_v35 = vand.u32 4294901760, %v2258_v33 }
 0x2a1   :  { %v2708_v37 = vand.u32 4294901760, %v2707_v56 }
 0x2a3   :  { %4240 = vmatmul.mubr.f32.vlgmr.msra.gmra.mrb[2].mxu0 %v4882_v60 }
 0x2a4   :  { %4243 = vmatpush3.msra.mxu0 %v1369_v58  ;;  %4270 = vmatmul.mubr.f32.vlgmr.msra.gmra.mrb[2].mxu1 %v4891_v63 }
 0x2a5   :  { %4273 = vmatpush3.msra.mxu1 %v1818_v3  ;;  %4244 = vmatprep.mubr.msk.f32.mxu0 %vm4590_vm10, %v4589_v61 }
 0x2a6   :  { %4247 = vmatprep.subr.mxu0 %v4589_v61  ;;  %4274 = vmatprep.mubr.msk.f32.mxu1 %vm4590_vm10, %v4589_v61 }
 0x2a7   :  { %4277 = vmatprep.subr.mxu1 %v4589_v61 }
 0x2ab   :  { %4245 = vmatmul.mubr.f32.vlgmr.msra.gmra.mrb[2].mxu0 %v1358_v62 }
 0x2ac   :  { %4248 = vmatpush3.msra.mxu0 %v4880_v59  ;;  %4275 = vmatmul.mubr.f32.vlgmr.msra.gmra.mrb[2].mxu1 %v1807_v4 }
 0x2ad   :  { %4278 = vmatpush3.msra.mxu1 %v4889_v36  ;;  %4249 = vmatprep.mubr.msk.f32.mxu0 %vm4590_vm10, %v4589_v61 }
 0x2ae   :  { %4252 = vmatprep.subr.mxu0 %v4589_v61  ;;  %4279 = vmatprep.mubr.msk.f32.mxu1 %vm4590_vm10, %v4589_v61 }
 0x2af   :  { %4282 = vmatprep.subr.mxu1 %v4589_v61 }
 0x2b3   :  { %4250 = vmatmul.mubr.f32.vlgmr.msra.gmra.mrb[2].mxu0 %v1359_v0 }
 0x2b4   :  { %4253 = vmatpush3.msra.mxu0 %v1370_v6  ;;  %4280 = vmatmul.mubr.f32.vlgmr.msra.gmra.mrb[2].mxu1 %v1808_v7 }
 0x2b5   :  { %4283 = vmatpush3.msra.mxu1 %v1819_v1  ;;  %4254 = vmatprep.mubr.msk.f32.mxu0 %vm4590_vm10, %v4589_v61 }
 0x2b6   :  { %4257 = vmatprep.subr.mxu0 %v4589_v61  ;;  %4284 = vmatprep.mubr.msk.f32.mxu1 %vm4590_vm10, %v4589_v61 }
 0x2b7   :  { %4287 = vmatprep.subr.mxu1 %v4589_v61 }
 0x2bb   :  { %4255 = vmatmul.mubr.f32.vlgmr.msra.gmra.mrb[2].mxu0 %v4882_v60 }
 0x2bc   :  { %4258 = vmatpush3.msra.mxu0 %v4880_v59  ;;  %4285 = vmatmul.mubr.f32.vlgmr.msra.gmra.mrb[2].mxu1 %v4891_v63  ;;  %v3617_v59 = vand.u32 4294901760, %v3616_v47  ;;  %v4050_v47 = vstv %s4074_s4 }
 0x2bd   :  { %4288 = vmatpush3.msra.mxu1 %v4889_v36  ;;  %4259 = vmatprep.mubr.msk.f32.mxu0 %vm4590_vm10, %v4589_v61  ;;  %v290_v36 = vld [vmem:[#allocation6] sm:$0xff] }
 0x2be   :  { %4289 = vmatprep.mubr.msk.f32.mxu1 %vm4590_vm10, %v4589_v61  ;;  %4292 = vmatprep.subr.mxu0 %v4589_v61 }
 0x2bf   :  { %4322 = vmatprep.subr.mxu1 %v4589_v61 }
 0x2c3   :  { %4260 = vmatmul.mubr.f32.vlgmr.msra.gmra.mrb[2].mxu0 %v4882_v60  ;;  %v3606_v60 = vand.u32 4294901760, %v3605_v54  ;;  %v4047_v54 = vmul.f32 %v4046_v28, %v4045_v13 }
 0x2c4   :  { %4290 = vmatmul.mubr.f32.vlgmr.msra.gmra.mrb[2].mxu1 %v4891_v63  ;;  %4293 = vmatpush3.msra.mxu0 %v4950_v20  ;;  %v291_v63 = vmul.f32 %v4758_v46, %v290_v36 }
 0x2c5   :  { %4323 = vmatpush3.msra.mxu1 %v4957_v22  ;;  %4294 = vmatprep.mubr.msk.f32.mxu0 %vm4590_vm10, %v4589_v61 }
 0x2c6   :  { %4297 = vmatprep.subr.mxu0 %v4589_v61  ;;  %4324 = vmatprep.mubr.msk.f32.mxu1 %vm4590_vm10, %v4589_v61 }
 0x2c7   :  { %4295 = vmatmul.mubr.f32.vlgmr.msra.gmra.mrb[4].mxu0 %v2259_v35  ;;  %4327 = vmatprep.subr.mxu1 %v4589_v61  ;;  %v4008_v35 = vld [vmem:[#allocation4] sm:$0xff] }
 0x2c8   :  { %4298 = vmatpush3.msra.mxu0 %v2270_v34  ;;  %4325 = vmatmul.mubr.f32.vlgmr.msra.gmra.mrb[4].mxu1 %v2708_v37  ;;  %v4012_v34 = vpop.permute.xlu0 %4011 }
 0x2c9   :  { %4328 = vmatpush3.msra.mxu1 %v2719_v45  ;;  %4299 = vmatprep.mubr.msk.f32.mxu0 %vm4590_vm10, %v4589_v61 }
 0x2ca   :  { %4302 = vmatprep.subr.mxu0 %v4589_v61  ;;  %4329 = vmatprep.mubr.msk.f32.mxu1 %vm4590_vm10, %v4589_v61 }
 0x2cb   :  { %4332 = vmatprep.subr.mxu1 %v4589_v61 }
 0x2cf   :  { %4300 = vmatmul.mubr.f32.vlgmr.msra.gmra.mrb[4].mxu0 %v4952_v21 }
 0x2d0   :  { %4303 = vmatpush3.msra.mxu0 %v2267_v24  ;;  %4330 = vmatmul.mubr.f32.vlgmr.msra.gmra.mrb[4].mxu1 %v4959_v23 }
 0x2d1   :  { %4333 = vmatpush3.msra.mxu1 %v2716_v26  ;;  %4304 = vmatprep.mubr.msk.f32.mxu0 %vm4590_vm10, %v4589_v61 }
 0x2d2   :  { %4307 = vmatprep.subr.mxu0 %v4589_v61  ;;  %4334 = vmatprep.mubr.msk.f32.mxu1 %vm4590_vm10, %v4589_v61 }
 0x2d3   :  { %4337 = vmatprep.subr.mxu1 %v4589_v61 }
 0x2d7   :  { %4305 = vmatmul.mubr.f32.vlgmr.msra.gmra.mrb[4].mxu0 %v2256_v25 }
 0x2d8   :  { %4308 = vmatpush3.msra.mxu0 %v4950_v20  ;;  %4335 = vmatmul.mubr.f32.vlgmr.msra.gmra.mrb[4].mxu1 %v2705_v27 }
 0x2d9   :  { %4338 = vmatpush3.msra.mxu1 %v4957_v22  ;;  %4309 = vmatprep.mubr.msk.f32.mxu0 %vm4590_vm10, %v4589_v61 }
 0x2da   :  { %4312 = vmatprep.subr.mxu0 %v4589_v61  ;;  %4339 = vmatprep.mubr.msk.f32.mxu1 %vm4590_vm10, %v4589_v61 }
 0x2db   :  { %4342 = vmatprep.subr.mxu1 %v4589_v61 }
 0x2df   :  { %4310 = vmatmul.mubr.f32.vlgmr.msra.gmra.mrb[4].mxu0 %v2257_v31 }
 0x2e0   :  { %4313 = vmatpush3.msra.mxu0 %v2268_v30  ;;  %4340 = vmatmul.mubr.f32.vlgmr.msra.gmra.mrb[4].mxu1 %v2706_v32 }
 0x2e1   :  { %4343 = vmatpush3.msra.mxu1 %v2717_v8  ;;  %4314 = vmatprep.mubr.msk.f32.mxu0 %vm4590_vm10, %v4589_v61 }
 0x2e2   :  { %4317 = vmatprep.subr.mxu0 %v4589_v61  ;;  %4344 = vmatprep.mubr.msk.f32.mxu1 %vm4590_vm10, %v4589_v61 }
 0x2e3   :  { %4347 = vmatprep.subr.mxu1 %v4589_v61 }
 0x2e7   :  { %4315 = vmatmul.mubr.f32.vlgmr.msra.gmra.mrb[4].mxu0 %v4952_v21 }
 0x2e8   :  { %4318 = vmatpush3.msra.mxu0 %v4950_v20  ;;  %4345 = vmatmul.mubr.f32.vlgmr.msra.gmra.mrb[4].mxu1 %v4959_v23 }
 0x2e9   :  { %4348 = vmatpush3.msra.mxu1 %v4957_v22  ;;  %4319 = vmatprep.mubr.msk.f32.mxu0 %vm4590_vm10, %v4589_v61 }
 0x2ea   :  { %4349 = vmatprep.mubr.msk.f32.mxu1 %vm4590_vm10, %v4589_v61  ;;  %4352 = vmatprep.subr.mxu0 %v4589_v61 }
 0x2eb   :  { %4382 = vmatprep.subr.mxu1 %v4589_v61 }
 0x2ef   :  { %4320 = vmatmul.mubr.f32.vlgmr.msra.gmra.mrb[4].mxu0 %v4952_v21 }
 0x2f0   :  { %4350 = vmatmul.mubr.f32.vlgmr.msra.gmra.mrb[4].mxu1 %v4959_v23  ;;  %4353 = vmatpush3.msra.mxu0 %v5018_v40 }
 0x2f1   :  { %4383 = vmatpush3.msra.mxu1 %v5025_v57  ;;  %4354 = vmatprep.mubr.msk.f32.mxu0 %vm4590_vm10, %v4589_v61 }
 0x2f2   :  { %4357 = vmatprep.subr.mxu0 %v4589_v61  ;;  %4384 = vmatprep.mubr.msk.f32.mxu1 %vm4590_vm10, %v4589_v61 }
 0x2f3   :  { %4355 = vmatmul.mubr.f32.vlgmr.msra.gmra.mrb[6].mxu0 %v3157_v55  ;;  %4387 = vmatprep.subr.mxu1 %v4589_v61 }
 0x2f4   :  { %4358 = vmatpush3.msra.mxu0 %v3168_v29  ;;  %4385 = vmatmul.mubr.f32.vlgmr.msra.gmra.mrb[6].mxu1 %v3606_v60  ;;  %v4054_v60 = vstv %s4075_s5 }
 0x2f5   :  { %4388 = vmatpush3.msra.mxu1 %v3617_v59  ;;  %4359 = vmatprep.mubr.msk.f32.mxu0 %vm4590_vm10, %v4589_v61 }
 0x2f6   :  { %4362 = vmatprep.subr.mxu0 %v4589_v61  ;;  %4389 = vmatprep.mubr.msk.f32.mxu1 %vm4590_vm10, %v4589_v61 }
 0x2f7   :  { %4392 = vmatprep.subr.mxu1 %v4589_v61 }
 0x2fb   :  { %4360 = vmatmul.mubr.f32.vlgmr.msra.gmra.mrb[6].mxu0 %v5020_v41 }
 0x2fc   :  { %4363 = vmatpush3.msra.mxu0 %v3165_v42  ;;  %4390 = vmatmul.mubr.f32.vlgmr.msra.gmra.mrb[6].mxu1 %v5027_v43 }
 0x2fd   :  { %4393 = vmatpush3.msra.mxu1 %v3614_v48  ;;  %4364 = vmatprep.mubr.msk.f32.mxu0 %vm4590_vm10, %v4589_v61 }
 0x2fe   :  { %4367 = vmatprep.subr.mxu0 %v4589_v61  ;;  %4394 = vmatprep.mubr.msk.f32.mxu1 %vm4590_vm10, %v4589_v61 }
 0x2ff   :  { %4397 = vmatprep.subr.mxu1 %v4589_v61 }
 0x303   :  { %4365 = vmatmul.mubr.f32.vlgmr.msra.gmra.mrb[6].mxu0 %v3154_v15  ;;  %v4014_v15 = vmul.f32 %v4012_v34, %v4008_v35 }
 0x304   :  { %4368 = vmatpush3.msra.mxu0 %v5018_v40  ;;  %4395 = vmatmul.mubr.f32.vlgmr.msra.gmra.mrb[6].mxu1 %v3603_v16 }
 0x305   :  { %4398 = vmatpush3.msra.mxu1 %v5025_v57  ;;  %4369 = vmatprep.mubr.msk.f32.mxu0 %vm4590_vm10, %v4589_v61 }
 0x306   :  { %4372 = vmatprep.subr.mxu0 %v4589_v61  ;;  %4399 = vmatprep.mubr.msk.f32.mxu1 %vm4590_vm10, %v4589_v61 }
 0x307   :  { %4402 = vmatprep.subr.mxu1 %v4589_v61 }
 0x30b   :  { %v366_v58 = vpop.xlane.xlu1 %365  ;;  %4370 = vmatmul.mubr.f32.vlgmr.msra.gmra.mrb[6].mxu0 %v3155_v50 }
 0x30c   :  { %v367_v62 = vadd.f32 %v366_v58, %v291_v63  ;;  %4373 = vmatpush3.msra.mxu0 %v3166_v49  ;;  %4400 = vmatmul.mubr.f32.vlgmr.msra.gmra.mrb[6].mxu1 %v3604_v51 }
 0x30d   :  { %4403 = vmatpush3.msra.mxu1 %v3615_v12  ;;  %4374 = vmatprep.mubr.msk.f32.mxu0 %vm4590_vm10, %v4589_v61 }
 0x30e   :  { %369 = vst.msk [vmem:[#allocation6] sm:$0xff] %vm45_vm1, %v367_v62  ;;  %4377 = vmatprep.subr.mxu0 %v4589_v61  ;;  %4404 = vmatprep.mubr.msk.f32.mxu1 %vm4590_vm10, %v4589_v61 }
 0x30f   :  { %4407 = vmatprep.subr.mxu1 %v4589_v61 }
 0x313   :  { %4375 = vmatmul.mubr.f32.vlgmr.msra.gmra.mrb[6].mxu0 %v5020_v41 }
 0x314   :  { %4378 = vmatpush3.msra.mxu0 %v5018_v40  ;;  %4405 = vmatmul.mubr.f32.vlgmr.msra.gmra.mrb[6].mxu1 %v5027_v43 }
 0x315   :  { %4408 = vmatpush3.msra.mxu1 %v5025_v57  ;;  %4379 = vmatprep.mubr.msk.f32.mxu0 %vm4590_vm10, %v4589_v61  ;;  %v4036_v46 = vld [vmem:[#allocation6] sm:$0xff] }
 0x316   :  { %4409 = vmatprep.mubr.msk.f32.mxu1 %vm4590_vm10, %v4589_v61  ;;  %4521 = vrcp.f32 %v4036_v46 }
 0x31b   :  { %4380 = vmatmul.mubr.f32.vlgmr.msra.gmra.mrb[6].mxu0 %v5020_v41  ;;  %v3982_v41 = vld [vmem:[#allocation3] sm:$0xff] }
 0x31c   :  { %4410 = vmatmul.mubr.f32.vlgmr.msra.gmra.mrb[6].mxu1 %v5027_v43 }
 0x320   :  { %v4522_v3 = vpop.eup %4521 }
 0x321   :  { %4040 = vperm.xlu0 %4502, %v4522_v3  }
 0x36a   :  { %v835_v4 = vpop.f32.mrb[0].mxu0 }
 0x36b   :  { %v4015_v6 = vrot.slane %v835_v4, 1  ;;  %v1284_v0 = vpop.f32.mrb[0].mxu1  ;;  %v4201_v1 = vpop.f32.mrb[1].mxu0 }
 0x36c   :  { %v3991_v7 = vrot.slane %v1284_v0, 7  ;;  %v4231_v5 = vpop.f32.mrb[1].mxu1 }
 0x36d   :  { %v4016_v52 = vsel %vm122_vm2, %v1284_v0, %v4015_v6 }
 0x36e   :  { %v3992_v11 = vsel %vm122_vm2, %v3991_v7, %v835_v4 }
 0x396   :  { %v1733_v2 = vpop.f32.mrb[2].mxu0 }
 0x397   :  { %v3993_v53 = vrot.slane %v1733_v2, 6  ;;  %v4017_v61 = vrot.slane %v1733_v2, 7  ;;  %v2182_v17 = vpop.f32.mrb[2].mxu1  ;;  %v4261_v18 = vpop.f32.mrb[3].mxu0 }
 0x398   :  { %v3995_v19 = vrot.slane %v2182_v17, 5  ;;  %v4019_v10 = vrot.slane %v2182_v17, 6  ;;  %v4291_v14 = vpop.f32.mrb[3].mxu1 }
 0x399   :  { %v3994_v20 = vsel %vm124_vm3, %v3993_v53, %v3992_v11  ;;  %v4018_v21 = vsel %vm124_vm3, %v4017_v61, %v4016_v52 }
 0x39a   :  { %v3996_v22 = vsel %vm126_vm4, %v3995_v19, %v3994_v20  ;;  %v4020_v23 = vsel %vm126_vm4, %v4019_v10, %v4018_v21 }
 0x3a0   :  { %v4041_v29 = vpop.permute.xlu0 %4040 }
 0x3c2   :  { %v2631_v24 = vpop.f32.mrb[4].mxu0 }
 0x3c3   :  { %v3997_v25 = vrot.slane %v2631_v24, 4  ;;  %v4021_v26 = vrot.slane %v2631_v24, 5  ;;  %v3080_v27 = vpop.f32.mrb[4].mxu1  ;;  %v4321_v30 = vpop.f32.mrb[5].mxu0 }
 0x3c4   :  { %v3999_v31 = vrot.slane %v3080_v27, 3  ;;  %v4023_v8 = vrot.slane %v3080_v27, 4  ;;  %v4351_v32 = vpop.f32.mrb[5].mxu1 }
 0x3c5   :  { %v3998_v9 = vsel %vm128_vm5, %v3997_v25, %v3996_v22  ;;  %v4022_v33 = vsel %vm128_vm5, %v4021_v26, %v4020_v23 }
 0x3c6   :  { %v4000_v44 = vsel %vm130_vm6, %v3999_v31, %v3998_v9  ;;  %v4024_v56 = vsel %vm130_vm6, %v4023_v8, %v4022_v33 }
 0x3ee   :  { %v3529_v45 = vpop.f32.mrb[6].mxu0 }
 0x3ef   :  { %v4001_v37 = vrot.slane %v3529_v45, 2  ;;  %v4025_v38 = vrot.slane %v3529_v45, 3  ;;  %v3978_v39 = vpop.f32.mrb[6].mxu1  ;;  %v4381_v40 = vpop.f32.mrb[7].mxu0 }
 0x3f0   :  { %v4003_v57 = vrot.slane %v3978_v39, 1  ;;  %v4027_v43 = vrot.slane %v3978_v39, 2  ;;  %v4411_v42 = vpop.f32.mrb[7].mxu1 }
 0x3f1   :  { %v4002_v48 = vsel %vm132_vm7, %v4001_v37, %v4000_v44  ;;  %v4026_v16 = vsel %vm132_vm7, %v4025_v38, %v4024_v56 }
 0x3f2   :  { %v4004_v49 = vsel %vm134_vm8, %v4003_v57, %v4002_v48  ;;  %v4028_v50 = vsel %vm134_vm8, %v4027_v43, %v4026_v16 }
 0x3f3   :  { %v4006_v12 = vadd.f32 %v4004_v49, %v3982_v41  ;;  %v4030_v51 = vadd.f32 %v4028_v50, %v4014_v15 }
 0x3f5   :  { %4007 = vst.msk [vmem:[#allocation3] sm:$0xff] %vm41_vm0, %v4006_v12  ;;  %4031 = vst.msk [vmem:[#allocation4] sm:$0xff] %vm41_vm0, %v4030_v51 }
 0x3fc   :  { %v4035_v55 = vld [vmem:[#allocation4] sm:$0xff]  ;;  %v4049_v59 = vld [vmem:[#allocation3] sm:$0xff] }
 0x3fd   :  { %v4043_v36 = vmul.f32 %v4041_v29, %v4035_v55  ;;  %v4051_v63 = vmul.f32 %v4050_v47, %v4049_v59 }
 0x3ff   :  { %v4052_v58 = vadd.f32 %v4051_v63, %v4047_v54  ;;  %v4055_v62 = vmul.f32 %v4054_v60, %v4043_v36 }
 0x401   :  { %v4056_v46 = vadd.f32 %v4055_v62, %v4052_v58 }
 0x403   :  { %4057 = vst.msk [vmem:[#allocation12] sm:$0xff] %vm41_vm0, %v4056_v46 }
 0x404   :  { %4566 = shalt.err (!%p4563_p1)
}
 0x405   :  { %s4567_s11 = scalar_lea.hbm %s5130_s2, 128 }
 0x406   :  { %p4568_p2 = scmp.ne.s32.totalorder %s5130_s2, %s4567_s11  ;;  %p4571_p3 = scmp.lt.u32.totalorder %s4567_s11, %s5130_s2 }
 0x408   :  { %p4573_p4 = pnand %p4571_p3, %p4568_p2 }
 0x40a   :  { %4576 = shalt.err (!%p4573_p4)
}
 0x40b   :  { %4067 = dma.vmem_to_hbm [thread:$0]  %s4065_s7, 128, %s5130_s2, [#allocation9]  }
 0x40c   :  { %4581 = dma.done.wait [#allocation9], 128  }
 0x40d   :  { %4582 = vsyncadd [#allocation9], 4294967168 }
 0x40e   :  { %4071 = vsyncpa [#allocation8], 1 }
 0x40f   :  { %4072 = vsyncpa [#allocation9], 1 }
 0x410   :  { %4073 = vsyncpa [#allocation10], 1 }

</bundles_post_ra>
